<compile_context>
chip_gen: v7x
topology: tpu7x:2x2x1
jax: 0.10.0
libtpu: 0.0.40
codegen_flags: <defaults>
</compile_context>

<pallas_src>
import functools

import jax
import jax.numpy as jnp
from jax.experimental import pallas as pl
from jax.experimental.pallas import tpu as pltpu


def _se3d_kernel(band_ref, x_ref, o_ref, acc_ref, *, true_s, tile_s, needs_mask):
    # band_ref: VMEM f32[C, C]   banded channel-conv matrix (resident, constant index map)
    # x_ref:    VMEM [1, C, TS]  one spatial tile of one batch row (native dtype)
    # o_ref:    VMEM [1, C, 1]   sigmoid gate for this batch row
    # acc_ref:  VMEM f32[C, 1]   running spatial sum (persists across the S grid axis)
    k = pl.program_id(1)
    nk = pl.num_programs(1)

    @pl.when(k == 0)
    def _init():
        acc_ref[...] = jnp.zeros_like(acc_ref)

    # Partial sum over this spatial tile.  Keep C on the sublane axis (keepdims reduce) so
    # no per-tile relayout is needed; layout work happens once per row in the finalize.
    x = x_ref[0].astype(jnp.float32)                       # (C, TS)
    if needs_mask:
        lane = jax.lax.broadcasted_iota(jnp.int32, x.shape, 1)
        x = jnp.where(lane + k * tile_s < true_s, x, 0.0)  # zero out past-the-end lanes
    acc_ref[...] += jnp.sum(x, axis=-1, keepdims=True)     # (C, 1)

    @pl.when(k == nk - 1)
    def _finalize():
        mean = acc_ref[...] * (1.0 / float(true_s))        # (C, 1) f32, true-S mean
        # Zero-padded k-tap conv over channels == banded (C, C) matmul.
        y = jnp.dot(band_ref[...], mean, preferred_element_type=jnp.float32)  # (C, 1)
        o_ref[0] = jax.nn.sigmoid(y).astype(o_ref.dtype)


def _pick_s_tile(s, c, itemsize, target_bytes=2 * 1024 * 1024):
    """Largest lane-aligned spatial tile with <= ~target_bytes per block (or full S)."""
    max_ts = max(128, ((target_bytes // max(1, c * itemsize)) // 128) * 128)
    if s <= 128 or max_ts >= s:
        return s                       # single full-extent tile along S
    return max_ts                      # multiple of 128; tail tile handled by masking


def se_3d_forward(x, conv_weight, s_tile=None):
    """x: (B, C, D, H, W); conv_weight: (1, 1, k, k) Conv2d weight (bias=False).

    Returns the sigmoid gate of shape (B, C, 1, 1, 1), matching SE_3D.forward.
    """
    B, C, D, H, W = x.shape
    S = D * H * W
    x_flat = x.reshape(B, C, S)
    itemsize = int(jnp.dtype(x.dtype).itemsize)

    # Only the center row of the kxk kernel touches the (1, C)-shaped pooled map.
    k_size = int(conv_weight.shape[-1])
    pad = (k_size - 1) // 2
    taps = conv_weight[0, 0, pad, :].astype(jnp.float32)            # (k,)
    # band[c, j] = taps[j - c + pad] when the tap lands in-bounds, else 0 (zero padding).
    c_idx = jnp.arange(C, dtype=jnp.int32)[:, None]
    j_idx = jnp.arange(C, dtype=jnp.int32)[None, :]
    off = j_idx - c_idx + pad
    band = jnp.where((off >= 0) & (off < k_size),
                     taps[jnp.clip(off, 0, k_size - 1)],
                     jnp.float32(0.0)).astype(jnp.float32)          # (C, C)

    ts = int(s_tile) if s_tile is not None else _pick_s_tile(S, C, itemsize)
    nk = pl.cdiv(S, ts)
    needs_mask = (S % ts) != 0

    kernel = functools.partial(_se3d_kernel, true_s=S, tile_s=ts, needs_mask=needs_mask)

    out = pl.pallas_call(
        kernel,
        out_shape=jax.ShapeDtypeStruct((B, C, 1), x.dtype),
        grid=(B, nk),                                               # S (reduction) axis last
        in_specs=[
            pl.BlockSpec((C, C), lambda b, k: (0, 0)),              # band: resident in VMEM
            pl.BlockSpec((1, C, ts), lambda b, k: (b, 0, k)),       # x tile: double-buffered
        ],
        out_specs=pl.BlockSpec((1, C, 1), lambda b, k: (b, 0, 0)),
        scratch_shapes=[pltpu.VMEM((C, 1), jnp.float32)],            # f32 accumulator
        compiler_params=pltpu.CompilerParams(
            dimension_semantics=("parallel", "arbitrary"),
            vmem_limit_bytes=32 * 1024 * 1024,
        ),
        cost_estimate=pl.CostEstimate(
            flops=2 * B * C * S + 2 * B * C * C,
            transcendentals=B * C,
            bytes_accessed=B * C * S * itemsize + C * C * 4 + B * C * itemsize,
        ),
    )(band, x_flat)

    return out.reshape(B, C, 1, 1, 1)


def se_3d_reference(x, conv_weight):
    """Pure-JAX reference matching the PyTorch module, for verification."""
    m = jnp.mean(x.astype(jnp.float32), axis=(2, 3, 4))             # (B, C)
    k_size = int(conv_weight.shape[-1])
    pad = (k_size - 1) // 2
    w = conv_weight[0, 0, pad, :].astype(jnp.float32)
    mp = jnp.pad(m, ((0, 0), (pad, pad)))
    C = m.shape[1]
    y = sum(w[t] * mp[:, t:t + C] for t in range(k_size))
    return jax.nn.sigmoid(y)[:, :, None, None, None].astype(x.dtype)


if __name__ == "__main__":
    key = jax.random.PRNGKey(0)
    kx, kw, kx2 = jax.random.split(key, 3)

    # Small 5-D input implied by AdaptiveAvgPool3d: (B, C, D, H, W), S = 256.
    B, C, D, H, W = 2, 8, 4, 8, 8
    x = jax.random.normal(kx, (B, C, D, H, W), dtype=jnp.float32)

    # Deterministic Conv2d(1, 1, 3, padding=1, bias=False) weight: shape (1, 1, 3, 3).
    conv_weight = (jax.random.uniform(kw, (1, 1, 3, 3), dtype=jnp.float32) - 0.5) * (2.0 / 3.0)

    y = jax.block_until_ready(se_3d_forward(x, conv_weight))
    y_ref = se_3d_reference(x, conv_weight)
    assert y.shape == (B, C, 1, 1, 1), y.shape
    assert jnp.allclose(y, y_ref, atol=1e-5, rtol=1e-5), "mismatch vs reference"

    # Also exercise the tiled + masked-tail reduction path (S = 200 with forced 128-lane tiles).
    x2 = jax.random.normal(kx2, (2, 8, 5, 5, 8), dtype=jnp.float32)
    y2 = jax.block_until_ready(se_3d_forward(x2, conv_weight, s_tile=128))
    assert jnp.allclose(y2, se_3d_reference(x2, conv_weight), atol=1e-5, rtol=1e-5), \
        "mismatch vs reference (tiled/masked path)"

    print("KERNEL_OK")
</pallas_src>

<mosaic_0001>
module attributes {stable_mosaic.version = 11 : i64} {
  func.func @_se3d_kernel(%arg0: i32, %arg1: i32, %arg2: memref<8x8xf32, #tpu.memory_space<vmem>>, %arg3: memref<1x8x256xf32, #tpu.memory_space<vmem>>, %arg4: memref<1x8x1xf32, #tpu.memory_space<vmem>>, %arg5: memref<8x1xf32, #tpu.memory_space<vmem>>) attributes {dimension_semantics = [#tpu.dimension_semantics<parallel>, #tpu.dimension_semantics<arbitrary>], iteration_bounds = array<i64: 2, 1>, scalar_prefetch = 0 : i64, scratch_operands = 1 : i64, tpu.core_type = #tpu.core_type<tc>, window_params = [{pipeline_mode = #tpu.pipeline_mode<synchronous>, transform_indices = @transform_0, window_bounds = array<i64: 8, 8>}, {transform_indices = @transform_1, window_bounds = array<i64: 1, 8, 256>}, {transform_indices = @transform_2, window_bounds = array<i64: 1, 8, 1>}]} {
    %c0_i32 = arith.constant 0 : i32
    %0 = arith.cmpi eq, %arg1, %c0_i32 : i32
    %1 = arith.extui %0 : i1 to i32
    %c0_i32_0 = arith.constant 0 : i32
    %2 = arith.cmpi ne, %1, %c0_i32_0 : i32
    scf.if %2 {
      %cst_9 = arith.constant 0.000000e+00 : f32
      %13 = vector.broadcast %cst_9 : f32 to vector<8x1xf32>
      %c0_10 = arith.constant 0 : index
      %c0_11 = arith.constant 0 : index
      %14 = vector.load %arg5[%c0_10, %c0_11] : memref<8x1xf32, #tpu.memory_space<vmem>>, vector<8x1xf32>
      tpu.vector_store %arg5[%c0_10, %c0_11], %13 {strides = array<i32>} : memref<8x1xf32, #tpu.memory_space<vmem>>, vector<8x1xf32>,
    } else {
    }
    %c0 = arith.constant 0 : index
    %c0_1 = arith.constant 0 : index
    %c0_2 = arith.constant 0 : index
    %3 = vector.load %arg3[%c0, %c0_1, %c0_2] : memref<1x8x256xf32, #tpu.memory_space<vmem>>, vector<1x8x256xf32>
    %4 = vector.shape_cast %3 : vector<1x8x256xf32> to vector<8x256xf32>
    %c0_3 = arith.constant 0 : index
    %c0_4 = arith.constant 0 : index
    %5 = vector.load %arg5[%c0_3, %c0_4] : memref<8x1xf32, #tpu.memory_space<vmem>>, vector<8x1xf32>
    %cst = arith.constant dense<0.000000e+00> : vector<8xf32>
    %6 = vector.multi_reduction <add>, %4, %cst [1] : vector<8x256xf32> to vector<8xf32>
    %7 = vector.shape_cast %6 : vector<8xf32> to vector<8x1xf32>
    %8 = arith.addf %5, %7 : vector<8x1xf32>
    %c0_5 = arith.constant 0 : index
    %c0_6 = arith.constant 0 : index
    %9 = vector.load %arg5[%c0_5, %c0_6] : memref<8x1xf32, #tpu.memory_space<vmem>>, vector<8x1xf32>
    tpu.vector_store %arg5[%c0_5, %c0_6], %8 {strides = array<i32>} : memref<8x1xf32, #tpu.memory_space<vmem>>, vector<8x1xf32>,
    %c0_i32_7 = arith.constant 0 : i32
    %10 = arith.cmpi eq, %arg1, %c0_i32_7 : i32
    %11 = arith.extui %10 : i1 to i32
    %c0_i32_8 = arith.constant 0 : i32
    %12 = arith.cmpi ne, %11, %c0_i32_8 : i32
    scf.if %12 {
      %c0_9 = arith.constant 0 : index
      %c0_10 = arith.constant 0 : index
      %13 = vector.load %arg5[%c0_9, %c0_10] : memref<8x1xf32, #tpu.memory_space<vmem>>, vector<8x1xf32>
      %cst_11 = arith.constant 3.906250e-03 : f32
      %14 = vector.broadcast %cst_11 : f32 to vector<8x1xf32>
      %15 = arith.mulf %13, %14 : vector<8x1xf32>
      %c0_12 = arith.constant 0 : index
      %c0_13 = arith.constant 0 : index
      %16 = vector.load %arg2[%c0_12, %c0_13] : memref<8x8xf32, #tpu.memory_space<vmem>>, vector<8x8xf32>
      %cst_14 = arith.constant dense<0.000000e+00> : vector<8x1xf32>
      %17 = tpu.matmul %16, %15, %cst_14 {dimension_numbers = #tpu.dot_dimension_numbers<[1], [0], [0], [1], [0, 0, 1, 1], [], []>} : vector<8x8xf32>, vector<8x1xf32>, vector<8x1xf32> -> vector<8x1xf32>
      %18 = arith.negf %17 : vector<8x1xf32>
      %19 = math.exp %18 : vector<8x1xf32>
      %cst_15 = arith.constant 1.000000e+00 : f32
      %20 = vector.broadcast %cst_15 : f32 to vector<8x1xf32>
      %21 = arith.addf %20, %19 : vector<8x1xf32>
      %22 = arith.divf %20, %21 : vector<8x1xf32>
      %c0_16 = arith.constant 0 : index
      %c0_17 = arith.constant 0 : index
      %c0_18 = arith.constant 0 : index
      %23 = vector.load %arg4[%c0_16, %c0_17, %c0_18] : memref<1x8x1xf32, #tpu.memory_space<vmem>>, vector<1x8x1xf32>
      %24 = vector.shape_cast %23 : vector<1x8x1xf32> to vector<8x1xf32>
      %25 = vector.shape_cast %22 : vector<8x1xf32> to vector<1x8x1xf32>
      tpu.vector_store %arg4[%c0_16, %c0_17, %c0_18], %25 {strides = array<i32>} : memref<1x8x1xf32, #tpu.memory_space<vmem>>, vector<1x8x1xf32>,
    } else {
    }
    return
  }
  func.func @transform_0(%arg0: i32, %arg1: i32) -> (i32, i32) {
    %c0_i32 = arith.constant 0 : i32
    %c0_i32_0 = arith.constant 0 : i32
    %c0_i32_1 = arith.constant 0 : i32
    return %c0_i32, %c0_i32_0 : i32, i32
  }
  func.func @transform_1(%arg0: i32, %arg1: i32) -> (i32, i32, i32) {
    %c0_i32 = arith.constant 0 : i32
    %c0_i32_0 = arith.constant 0 : i32
    return %arg0, %c0_i32, %arg1 : i32, i32, i32
  }
  func.func @transform_2(%arg0: i32, %arg1: i32) -> (i32, i32, i32) {
    %c0_i32 = arith.constant 0 : i32
    %c0_i32_0 = arith.constant 0 : i32
    %c0_i32_1 = arith.constant 0 : i32
    return %arg0, %c0_i32, %c0_i32_0 : i32, i32, i32
  }
}

</mosaic_0001>

<bundles_post_ra>
// kernel: tpu_custom_call.1
= control target key start
LH: loop header
LB: loop body
LE: loop exit
PB: predicated region body
PF: predicated region fallthrough
CT: control target
= control target key end

     0   :  { %7 = vsyncpa [#allocation4], 0  ;;  %s775_s0 = inlined_call_operand.hbm [shape: f32[8,8], index: 0, kind: input, shape index: {}]   ;;  %s776_s1 = inlined_call_operand.hbm [shape: f32[2,8,256], index: 1, kind: input, shape index: {}]   ;;  %s777_s2 = inlined_call_operand.vmem [shape: f32[2,8,1], index: 2, kind: output, shape index: {}]  }
   0x1   :  { %8 = vsyncpa [#allocation6], 0 }
   0x2   :  { %10 = vsyncpa [#allocation6 + $0x1], 0  ;;  %s609_s9 = smov 0   ;;  %s611_s10 = smov 0  }
   0x3   :  { %s613_s11 = smov 0   ;;  %s615_s12 = smov 0  }
   0x4   :  { %s617_s13 = smov 0   ;;  %s619_s14 = smov 0  }
   0x5 LB: > { %s380_s15 = sadd.s32 4294967295, %s588_s14   ;;  %p71_p0 = scmp.ne.s32.totalorder %s572_s10, %s568_s9  ;;  %s588_s14 = sphi %s619_s14, %s16_s14   ;;  %s584_s13 = sphi %s617_s13, %s796_s13   ;;  %s580_s12 = sphi %s615_s12, %s795_s12   ;;  %s576_s11 = sphi %s613_s11, %s794_s11   ;;  %s572_s10 = sphi %s611_s10, %s793_s10   ;;  %s568_s9 = sphi %s609_s9, %s792_s9  }
   0x6   : > { %p639_p1 = scmp.eq.s32.totalorder %s380_s15, 0  ;;  %p382_p2 = scmp.ge.s32.totalorder %s588_s14, 1 }
   0x7   : > { %p108_p3 = scmp.lt.s32.totalorder %s588_s14, 3  ;;  %s590_s19 = smov [#allocation3]  }
   0x8   : > { %s782_s16 = scalar_select %p639_p1, 1, 0 }
   0x9   : > { %p647_p4 = por %p639_p1, %p71_p0  ;;  %p651_p5 = pnand %p382_p2, %p108_p3 }
   0xa   : > { %s121_s20 = sshll.u32 %s590_s19, 4  ;;  %s28_s22 = sadd.s32 1, %s584_s13  ;;  %s122_s20 = int_to_ptr.vmem [resolvable:$true] %s121_s20 }
   0xb   : > { %s783_s17 = scalar_select %p647_p4, 1, 0 }
   0xc   : > { %s784_s18 = scalar_select %p651_p5, 1, 0 }
   0xd   : > { %p410_p6 = pneg %p651_p5  ;;  %s58_s23 = sadd.s32 1, %s576_s11 }
   0xe   : > { %p665_p8 = scmp.ge.s32.totalorder %s28_s22, 2  ;;  %s476_s27 = scalar_lea.hbm %s775_s0, 128 }
   0xf   : > { %p659_p7 = pnand %p410_p6, %p639_p1  ;;  %p477_p9 = scmp.ne.s32.totalorder %s775_s0, %s476_s27 }
  0x10   : > { %s786_s24 = scalar_select %p665_p8, 1, 0 }
  0x11   : > { %p478_p10 = pneg %p659_p7  ;;  %p483_p13 = scmp.lt.u32.totalorder %s476_s27, %s775_s0 }
  0x13   : > { %p479_p11 = pnand %p478_p10, %p477_p9 }
  0x15   : > { %p480_p12 = pneg %p479_p11 }
  0x17   : > { %p485_p0 = pnand %p483_p13, %p480_p12 }
  0x19   : > { %488 = shalt.err (!%p485_p0)
}
  0x1a   : > { %s489_s4 = scalar_lea.vmem %s122_s20, 128  ;;  %p497_p4 = scmp.lt.s32.totalorder %s122_s20, %s122_s20 }
  0x1b   : > { %p490_p2 = scmp.ne.s32.totalorder %s122_s20, %s489_s4  ;;  %p498_p1 = scmp.lt.s32.totalorder %s489_s4, %s489_s4 }
  0x1d   : > { %p492_p3 = pnand %p490_p2, %p478_p10  ;;  %p499_p5 = por %p498_p1, %p497_p4 }
  0x1f   : > { %p493_p6 = pneg %p492_p3 }
  0x21   : > { %p500_p8 = pnand %p499_p5, %p493_p6 }
  0x23   : > { %503 = shalt.err (!%p500_p8)
}
  0x24   : > { %413 = dma.hbm_to_vmem [thread:$0]  (!%p659_p7), %s775_s0, 128, %s122_s20, [#allocation4]  }
  0x25   : > { %p787_p9 = scmp.ne.s32.totalorder %s786_s24, 0  ;;  %p65_p1 = scmp.ne.s32.totalorder %s576_s11, %s572_s10 }
  0x26   : > { %p66_p4 = scmp.eq.s32.totalorder %s588_s14, 0  ;;  %p419_p5 = scmp.lt.s32.totalorder %s588_s14, 2 }
  0x27   : > { %s798_s22 = smov (%p787_p9, %s28_s22), 0  ;;  %s132_s8 = sand.u32 1, %s576_s11  }
  0x28   : > { %s53_s7 = ssub.s32 %s584_s13, %s798_s22  ;;  %p67_p10 = por %p66_p4, %p65_p1 }
  0x29   : > { %p56_p8 = scmp.eq.s32.totalorder %s53_s7, 0  ;;  %s396_s9 = sshll.u32 %s584_s13, 8 }
  0x2a   : > { %s385_s19 = sshll.u32 %s132_s8, 4  ;;  %s705_s20 = scalar_lea.hbm %s776_s1, %s396_s9 }
  0x2b   : > { %s700_s15 = scalar_select %p56_p8, %s576_s11, %s58_s23  }
  0x2c   : > { %s136_s24 = scalar_lea.vmem [#allocation5], %s385_s19  ;;  %p707_p7 = pnand %p419_p5, %p67_p10 }
  0x2d   : > { %s146_s26 = sshll.u32 %s136_s24, 4  ;;  %s133_s23 = scalar_lea.sflag [#allocation6], %s132_s8  ;;  %s711_s26 = int_to_ptr.vmem [resolvable:$true] %s146_s26 }
  0x2e   : > { %s504_s28 = scalar_lea.hbm %s705_s20, 256  ;;  %p506_p12 = pneg %p707_p7 }
  0x2f   : > { %p505_p11 = scmp.ne.s32.totalorder %s705_s20, %s504_s28  ;;  %s509_s3 = scalar_lea.hbm %s776_s1, 512 }
  0x30   : > { %p510_p2 = scmp.lt.u32.totalorder %s705_s20, %s776_s1  ;;  %p511_p3 = scmp.lt.u32.totalorder %s509_s3, %s504_s28 }
  0x31   : > { %p507_p13 = pnand %p506_p12, %p505_p11  ;;  %p513_p9 = scmp.lt.u32.totalorder %s504_s28, %s705_s20 }
  0x32   : > { %p512_p6 = por %p511_p3, %p510_p2 }
  0x33   : > { %p508_p0 = pneg %p507_p13 }
  0x34   : > { %p514_p1 = por %p513_p9, %p512_p6 }
  0x36   : > { %p515_p4 = pnand %p514_p1, %p508_p0 }
  0x38   : > { %518 = shalt.err (!%p515_p4)
}
  0x39   : > { %s519_s6 = scalar_lea.vmem %s711_s26, 256  ;;  %s591_s7 = smov [#allocation5]  }
  0x3a   : > { %p520_p5 = scmp.ne.s32.totalorder %s711_s26, %s519_s6  ;;  %s524_s8 = sshll.u32 %s591_s7, 4  ;;  %s525_s8 = int_to_ptr.vmem [resolvable:$false] %s524_s8 }
  0x3b   : > { %s526_s9 = scalar_lea.vmem %s525_s8, 512  ;;  %p527_p11 = scmp.lt.s32.totalorder %s711_s26, %s525_s8 }
  0x3c   : > { %p522_p8 = pnand %p520_p5, %p506_p12  ;;  %p528_p13 = scmp.lt.s32.totalorder %s526_s9, %s519_s6 }
  0x3e   : > { %p523_p10 = pneg %p522_p8  ;;  %p529_p2 = por %p528_p13, %p527_p11 }
  0x40   : > { %p530_p3 = pnand %p529_p2, %p523_p10 }
  0x42   : > { %533 = shalt.err (!%p530_p3)
}
  0x43   : > { %417 = dma.hbm_to_vmem [thread:$0]  (!%p707_p7), %s705_s20, 256, %s711_s26, %s133_s23  }
  0x44   : > { %p789_p0 = scmp.ne.s32.totalorder %s784_s18, 0 }
  0x45   : > { %p790_p12 = scmp.ne.s32.totalorder (!%p789_p0), %s782_s16, 0 }
  0x46   : > { %155 = sbr.rel (%p789_p0) target bundleno = 479 (0x1df), region = 28 }
  0x4d   : > { %559 = dma.done.wait (%p790_p12), [#allocation4], 128  }
  0x4e   : > { %561 = vsyncadd (%p790_p12), [#allocation4], 4294967168  ;;  %s161_s19 = sand.u32 1, %s572_s10   ;;  %p791_p6 = scmp.ne.s32.totalorder %s783_s17, 0 }
  0x4f   : > { %s390_s21 = sshll.u32 %s161_s19, 4  ;;  %s162_s25 = scalar_lea.sflag [#allocation6], %s161_s19 }
  0x50   : > { %s165_s24 = scalar_lea.vmem [#allocation5], %s390_s21 }
  0x51   : > { %563 = dma.done.wait (%p791_p6), %s162_s25, 256  }
  0x52   : > { %565 = vsyncadd (%p791_p6), %s162_s25, 4294967040  ;;  %vm194_vm0 = vcmask 7168   ;;  %v592_v0 = vmov 0.0   ;;  %v196_v1 = vld [vmem:[%s165_s24] sm:$0xff]  ;;  %v197_v2 = vld [vmem:[%s165_s24 + $0x8] sm:$0xff]  ;;  %vm593_vm1 = vmmov 0  }
  0x53   : > { %195 = vst.msk [vmem:[#allocation2] sm:$0xff] %vm194_vm0, %v592_v0  ;;  %399 = vmatprep.subr.mxu0 %v592_v0  ;;  %v199_v3 = vadd.f32 %v197_v2, %v196_v1  ;;  %401 = vmatprep.mubr.msk.f32.mxu0 %vm593_vm1, %v592_v0  ;;  %v210_v9 = vld [vmem:[#allocation3] sm:$0xff]  ;;  %vm211_vm2 = vcmask 64512   ;;  %p186_p7 = scmp.lt.s32.totalorder %s580_s12, 1 }
  0x55   : > { %200 = vadd.xlane.f32.xlu0 %v199_v3  ;;  %s800_s12 = smov (!%p186_p7, %s580_s12), 1 }
  0x56   : > { %s391_s16 = sshll.u32 %s800_s12, 3 }
  0x57   : > { %s189_s20 = scalar_lea.vmem %s777_s2, %s391_s16 }
  0x5a   : > { %v198_v4 = vld [vmem:[#allocation2] sm:$0xff] }
  0xe2   : > { %v201_v5 = vpop.xlane.xlu0 %200 }
  0xe3   : > { %v202_v6 = vadd.f32 %v201_v5, %v198_v4 }
  0xe5   : > { %204 = vst.msk [vmem:[#allocation2] sm:$0xff] %vm194_vm0, %v202_v6 }
  0xec   : > { %v208_v7 = vld [vmem:[#allocation2] sm:$0xff] }
  0xed   : > { %v209_v8 = vmul.f32 0.00390625, %v208_v7 }
  0xef   : > { %400 = vmatpush3.msra.mxu0 %v209_v8 }
  0xf0   : > { %402 = vmatmul.mubr.msk.f32.vlgmr.msra.gmra.mrb[0].mxu0 %vm211_vm2, %v210_v9 }
 0x1c3   : > { %v281_v10 = vpop.f32.mrb[0].mxu0 }
 0x1c4   : > { %v393_v11 = vmul.f32 -1.442695, %v281_v10  ;;  %v403_v12 = vpop.f32.mrb[1].mxu0 }
 0x1c6   : > { %472 = vpow2.f32 %v393_v11 }
 0x1d0   : > { %v473_v13 = vpop.eup %472 }
 0x1d1   : > { %v288_v14 = vadd.f32 1.0, %v473_v13 }
 0x1d3   : > { %474 = vrcp.f32 %v288_v14 }
 0x1dd   : > { %v475_v15 = vpop.eup %474 }
 0x1de   : > { %291 = vst.msk [vmem:[%s189_s20] sm:$0xff] %vm194_vm0, %v475_v15 }
 0x1df PF: > { %s16_s14 = sadd.s32 1, %s588_s14   ;;  %s792_s9 = smov %s572_s10 }
 0x1e0   : > { %p13_p9 = scmp.ge.s32.totalorder %s16_s14, 4   ;;  %s793_s10 = smov %s576_s11 }
 0x1e1   : > { %s794_s11 = smov %s700_s15  ;;  %s795_s12 = smov %s584_s13 }
 0x1e2   : > { %s796_s13 = smov %s798_s22  ;;  %15 = sbr.rel (!%p13_p9) target bundleno = 5 (0x5), region = 81 }
 0x1e9   :  { %311 = vsyncpa [#allocation4], 1 }
 0x1ea   :  { %313 = vsyncpa [#allocation4 + $0x1], 1 }
 0x1eb   :  { %314 = vsyncpa [#allocation6], 1 }
 0x1ec   :  { %316 = vsyncpa [#allocation6 + $0x1], 1 }

</bundles_post_ra>
